<compile_context>
chip_gen: v6e
topology: v6e:2x2x1
jax: 0.10.0
libtpu: 0.0.40
codegen_flags: <defaults>
</compile_context>

<pallas_src>
import functools

import jax
import jax.numpy as jnp
from jax import lax
from jax.experimental import pallas as pl
from jax.experimental.pallas import tpu as pltpu


# ----------------------------------------------------------------------------
# Tiling / VMEM helpers
# ----------------------------------------------------------------------------

def _pick_tile(dim, preferred):
    """Largest tile <= preferred that divides dim, preferring 128-/8-aligned
    tiles so blocks stay (8,128)-layout friendly.  Never falls back to the
    whole array for large non-divisible dims."""
    if dim <= preferred:
        return dim
    if dim % preferred == 0:
        return preferred
    for align in (128, 8, 1):
        t = (preferred // align) * align
        while t >= align:
            if dim % t == 0:
                return t
            t -= align
    return dim


def _pick_out_tile(dim, preferred):
    """Tile for a lane (last) dim: a multiple of 128 dividing dim, else the
    full extent (small models)."""
    if dim <= preferred:
        return dim
    t = (min(preferred, dim) // 128) * 128
    while t >= 128:
        if dim % t == 0:
            return t
        t -= 128
    return dim


def _vmem_limit(block_bytes, scratch_bytes=0):
    """Scoped-VMEM limit from the double-buffered block budget + scratch, with
    headroom; capped at 64 MiB (v7x physical) so it is safe on every gen."""
    budget = 2 * block_bytes + scratch_bytes
    budget = int(budget * 1.5) + (2 << 20)
    return int(max(16 << 20, min(budget, 64 << 20)))


# ----------------------------------------------------------------------------
# Kernels
# ----------------------------------------------------------------------------

def _rmsnorm_qkv_kernel(x_ref, g_ref, w_ref, b_ref, s_ref, o_ref, xn_ref,
                        *, eps, rms_scale):
    # x_ref: (tm, D), g_ref: (1, D), w_ref: (D, tn), b_ref/s_ref: (1, tn)
    # o_ref: (tm, tn), xn_ref: (tm, D) scratch (normalized rows, cached per i)
    @pl.when(pl.program_id(1) == 0)
    def _norm():
        x = x_ref[...].astype(jnp.float32)                    # norm math in f32
        norm = jnp.sqrt(jnp.sum(x * x, axis=-1, keepdims=True))
        xn = x / jnp.maximum(norm, eps)                       # F.normalize(dim=-1)
        xn = xn * rms_scale * g_ref[...].astype(jnp.float32)
        xn_ref[...] = xn.astype(xn_ref.dtype)                 # keep MXU operand dtype

    acc = jnp.dot(xn_ref[...], w_ref[...], preferred_element_type=jnp.float32)
    acc = (acc + b_ref[...].astype(jnp.float32)) * s_ref[...].astype(jnp.float32)
    o_ref[...] = acc.astype(o_ref.dtype)


def _linear_kernel(x_ref, w_ref, b_ref, o_ref, acc_ref):
    # x_ref: (tm, tk), w_ref: (tk, tn), b_ref: (1, tn), acc_ref: (tm, tn) f32
    k = pl.program_id(2)

    @pl.when(k == 0)
    def _init():
        acc_ref[...] = jnp.zeros_like(acc_ref)

    acc_ref[...] += jnp.dot(x_ref[...], w_ref[...],
                            preferred_element_type=jnp.float32)

    @pl.when(k == pl.num_programs(2) - 1)
    def _finalize():
        o_ref[...] = (acc_ref[...] + b_ref[...].astype(jnp.float32)
                      ).astype(o_ref.dtype)


def _flash_attn_kernel(qi_tab_ref, ki_tab_ref, q_ref, k_ref, v_ref, o_ref,
                       m_ref, l_ref, acc_ref, *, heads, dim_head, tq, tk, n_k):
    # q_ref: (1, tq, E), k_ref/v_ref: (1, tk, E), o_ref: (1, tq, E)
    # m_ref/l_ref: (tq, H) f32 scratch, acc_ref: (tq, E) f32 scratch
    step = pl.program_id(1)
    qi = qi_tab_ref[step]
    ki = ki_tab_ref[step]
    q_start = qi * tq
    kv_start = ki * tk
    last_ki = jnp.minimum(n_k - 1, (q_start + tq - 1) // tk)

    @pl.when(ki == 0)
    def _init():
        m_ref[...] = jnp.full_like(m_ref, -1e30)
        l_ref[...] = jnp.zeros_like(l_ref)
        acc_ref[...] = jnp.zeros_like(acc_ref)

    def tile_update(masked):
        q = q_ref[0]                          # (tq, E), q already scaled
        k = k_ref[0]                          # (tk, E)
        v = v_ref[0]
        m_prev = m_ref[...]                   # (tq, H) single full-width loads
        l_prev = l_ref[...]
        if masked:
            # Only diagonal tiles pay for the mask build; additive -1e30 is
            # reused for both the running max and exp (exp underflows to 0).
            row = q_start + lax.broadcasted_iota(jnp.int32, (tq, tk), 0)
            col = kv_start + lax.broadcasted_iota(jnp.int32, (tq, tk), 1)
            neg = jnp.where(col <= row, 0.0, -1e30).astype(jnp.float32)

        m_cols, l_cols, alpha_parts, pv_parts = [], [], [], []
        for h in range(heads):                # static unroll over heads
            sl = slice(h * dim_head, (h + 1) * dim_head)
            s = lax.dot_general(q[:, sl], k[:, sl],
                                (((1,), (1,)), ((), ())),
                                preferred_element_type=jnp.float32)   # (tq, tk)
            if masked:
                s = s + neg
            m_p = m_prev[:, h:h + 1]                                  # (tq, 1)
            m_n = jnp.maximum(m_p, jnp.max(s, axis=-1, keepdims=True))
            alpha = jnp.exp(m_p - m_n)
            p = jnp.exp(s - m_n)                                      # masked -> 0
            l_cols.append(alpha * l_prev[:, h:h + 1]
                          + jnp.sum(p, axis=-1, keepdims=True))
            m_cols.append(m_n)
            alpha_parts.append(jnp.broadcast_to(alpha, (tq, dim_head)))
            pv_parts.append(jnp.dot(p.astype(v.dtype), v[:, sl],
                                    preferred_element_type=jnp.float32))

        # Single full-width scratch updates (no per-head masked partial stores).
        m_ref[...] = jnp.concatenate(m_cols, axis=-1)
        l_ref[...] = jnp.concatenate(l_cols, axis=-1)
        acc_ref[...] = (jnp.concatenate(alpha_parts, axis=-1) * acc_ref[...]
                        + jnp.concatenate(pv_parts, axis=-1))

    # Interior tiles (fully below the diagonal) skip all masking work.
    interior = (kv_start + tk) <= (q_start + 1)

    @pl.when(interior)
    def _interior():
        tile_update(masked=False)

    @pl.when(jnp.logical_not(interior))
    def _diagonal():
        tile_update(masked=True)

    @pl.when(ki == last_ki)
    def _finalize():
        inv = pl.reciprocal(l_ref[...], approx=True)          # EUP slot, (tq, H)
        inv_full = jnp.concatenate(
            [jnp.broadcast_to(inv[:, h:h + 1], (tq, dim_head))
             for h in range(heads)], axis=-1)                 # (tq, E)
        # One lane-dense, full-width store.
        o_ref[0] = (acc_ref[...] * inv_full).astype(o_ref.dtype)


# ----------------------------------------------------------------------------
# Wrappers
# ----------------------------------------------------------------------------

def rmsnorm_qkv(x2d, gamma, w_qkv, b_qkv, scale_vec, *, tm_pref=256, tn_pref=512):
    # x2d: (M, D) -> qkv (M, 3E); q columns already scaled by dim_head**-0.5
    M, D = x2d.shape
    three_e = w_qkv.shape[1]
    tm = _pick_tile(M, tm_pref)
    tn = _pick_out_tile(three_e, tn_pref)
    xn_dtype = w_qkv.dtype

    block_bytes = (tm * D * x2d.dtype.itemsize
                   + D * gamma.dtype.itemsize
                   + D * tn * w_qkv.dtype.itemsize
                   + tn * (b_qkv.dtype.itemsize + scale_vec.dtype.itemsize)
                   + tm * tn * x2d.dtype.itemsize)
    scratch_bytes = tm * D * jnp.dtype(xn_dtype).itemsize

    kernel = functools.partial(_rmsnorm_qkv_kernel, eps=1e-12,
                               rms_scale=float(D) ** 0.5)
    return pl.pallas_call(
        kernel,
        out_shape=jax.ShapeDtypeStruct((M, three_e), x2d.dtype),
        grid=(M // tm, three_e // tn),
        in_specs=[
            pl.BlockSpec((tm, D), lambda i, j: (i, 0)),
            pl.BlockSpec((1, D), lambda i, j: (0, 0)),
            pl.BlockSpec((D, tn), lambda i, j: (0, j)),
            pl.BlockSpec((1, tn), lambda i, j: (0, j)),
            pl.BlockSpec((1, tn), lambda i, j: (0, j)),
        ],
        out_specs=pl.BlockSpec((tm, tn), lambda i, j: (i, j)),
        scratch_shapes=[pltpu.VMEM((tm, D), xn_dtype)],
        compiler_params=pltpu.CompilerParams(
            dimension_semantics=("parallel", "arbitrary"),
            vmem_limit_bytes=_vmem_limit(block_bytes, scratch_bytes)),
    )(x2d, gamma.reshape(1, D), w_qkv, b_qkv.reshape(1, three_e),
      scale_vec.reshape(1, three_e))


def linear(x2d, w, b, *, tm_pref=256, tn_pref=256, tk_pref=512):
    # Tiled GEMM with f32 accumulator: out = x2d @ w + b
    M, K = x2d.shape
    n_out = w.shape[1]
    tm = _pick_tile(M, tm_pref)
    tn = _pick_tile(n_out, tn_pref)
    tk = _pick_tile(K, tk_pref)

    block_bytes = (tm * tk * x2d.dtype.itemsize + tk * tn * w.dtype.itemsize
                   + tn * b.dtype.itemsize + tm * tn * x2d.dtype.itemsize)
    scratch_bytes = tm * tn * 4

    return pl.pallas_call(
        _linear_kernel,
        out_shape=jax.ShapeDtypeStruct((M, n_out), x2d.dtype),
        grid=(M // tm, n_out // tn, K // tk),
        in_specs=[
            pl.BlockSpec((tm, tk), lambda i, j, k: (i, k)),
            pl.BlockSpec((tk, tn), lambda i, j, k: (k, j)),
            pl.BlockSpec((1, tn), lambda i, j, k: (0, j)),
        ],
        out_specs=pl.BlockSpec((tm, tn), lambda i, j, k: (i, j)),
        scratch_shapes=[pltpu.VMEM((tm, tn), jnp.float32)],
        compiler_params=pltpu.CompilerParams(
            dimension_semantics=("parallel", "parallel", "arbitrary"),
            vmem_limit_bytes=_vmem_limit(block_bytes, scratch_bytes)),
    )(x2d, w, b.reshape(1, n_out))


def flash_causal_attention(qkv, *, heads, dim_head, tq_pref=256, tk_pref=256):
    # qkv: (B, N, 3E), q columns pre-scaled.  Output: (B, N, E).
    # NOTE(v5e): with the 16 MiB default scoped VMEM and large E prefer 128
    # tiles; here we also set vmem_limit_bytes explicitly so 256 works.
    B, N, three_e = qkv.shape
    E = heads * dim_head
    assert three_e == 3 * E

    # Zero-copy column-block reads of the fused qkv when E is 128-lane aligned;
    # otherwise fall back to XLA slices so every block spans its full last dim.
    if E % 128 == 0:
        q_in, k_in, v_in = qkv, qkv, qkv
        qcol, kcol, vcol = 0, 1, 2
    else:
        q_in = lax.slice_in_dim(qkv, 0, E, axis=2)
        k_in = lax.slice_in_dim(qkv, E, 2 * E, axis=2)
        v_in = lax.slice_in_dim(qkv, 2 * E, 3 * E, axis=2)
        qcol, kcol, vcol = 0, 0, 0

    tq = _pick_tile(N, tq_pref)
    tk = _pick_tile(N, tk_pref)
    n_q, n_k = N // tq, N // tk

    # Compacted causal step table: enumerate only lower-triangular tile pairs.
    steps_q, steps_k = [], []
    for qi in range(n_q):
        last = min(n_k - 1, ((qi + 1) * tq - 1) // tk)
        for ki in range(last + 1):
            steps_q.append(qi)
            steps_k.append(ki)
    qi_tab = jnp.asarray(steps_q, dtype=jnp.int32)
    ki_tab = jnp.asarray(steps_k, dtype=jnp.int32)
    n_steps = len(steps_q)

    kernel = functools.partial(_flash_attn_kernel, heads=heads,
                               dim_head=dim_head, tq=tq, tk=tk, n_k=n_k)

    def q_map(b, s, qi_t, ki_t):
        return (b, qi_t[s], qcol)

    def k_map(b, s, qi_t, ki_t):
        return (b, ki_t[s], kcol)

    def v_map(b, s, qi_t, ki_t):
        return (b, ki_t[s], vcol)

    def o_map(b, s, qi_t, ki_t):
        return (b, qi_t[s], 0)

    itemsize = qkv.dtype.itemsize
    block_bytes = (2 * tq * E + 2 * tk * E) * itemsize          # q, o, k, v
    scratch_bytes = 2 * tq * heads * 4 + tq * E * 4

    grid_spec = pltpu.PrefetchScalarGridSpec(
        num_scalar_prefetch=2,
        grid=(B, n_steps),
        in_specs=[
            pl.BlockSpec((1, tq, E), q_map),
            pl.BlockSpec((1, tk, E), k_map),
            pl.BlockSpec((1, tk, E), v_map),
        ],
        out_specs=pl.BlockSpec((1, tq, E), o_map),
        scratch_shapes=[
            pltpu.VMEM((tq, heads), jnp.float32),   # running max m
            pltpu.VMEM((tq, heads), jnp.float32),   # running sum l
            pltpu.VMEM((tq, E), jnp.float32),       # output accumulator
        ],
    )

    # On v7x (2 TCs) the batch axis is the megacore-parallel axis; the step
    # axis carries the sequential online-softmax state and stays 'arbitrary'.
    return pl.pallas_call(
        kernel,
        out_shape=jax.ShapeDtypeStruct((B, N, E), qkv.dtype),
        grid_spec=grid_spec,
        compiler_params=pltpu.CompilerParams(
            dimension_semantics=("parallel", "arbitrary"),
            vmem_limit_bytes=_vmem_limit(block_bytes, scratch_bytes)),
    )(qi_tab, ki_tab, q_in, k_in, v_in)


def causal_full_attention(x, params, *, heads, dim_head,
                          attn_block_q=256, attn_block_kv=256, qkv_block_n=512):
    B, N, D = x.shape
    E = heads * dim_head
    M = B * N

    # Per-column scale vector: q columns get dim_head**-0.5 (applied to the f32
    # projection result inside the kernel), k/v columns get 1.
    q_scale = float(dim_head) ** -0.5
    scale_vec = jnp.concatenate([
        jnp.full((E,), q_scale, dtype=jnp.float32),
        jnp.ones((2 * E,), dtype=jnp.float32)])

    # Fused RMSNorm + tiled QKV projection, output in (B*N, 3E) layout so no
    # head transposes are needed downstream.
    qkv = rmsnorm_qkv(x.reshape(M, D), params["gamma"], params["w_qkv"],
                      params["b_qkv"], scale_vec, tn_pref=qkv_block_n)
    qkv = qkv.reshape(B, N, 3 * E)

    # Flash-style causal attention over the fused qkv; output (B, N, H*Dh).
    o = flash_causal_attention(qkv, heads=heads, dim_head=dim_head,
                               tq_pref=attn_block_q, tk_pref=attn_block_kv)

    # Output projection (tiled GEMM).
    out = linear(o.reshape(M, E), params["w_out"], params["b_out"])
    return out.reshape(B, N, D)


# ----------------------------------------------------------------------------
# Pure-JAX reference (for correctness check)
# ----------------------------------------------------------------------------

def reference(x, params, *, heads, dim_head):
    B, N, D = x.shape
    dim_inner = heads * dim_head
    norm = jnp.sqrt(jnp.sum(x * x, axis=-1, keepdims=True))
    xn = x / jnp.maximum(norm, 1e-12) * (D ** 0.5) * params["gamma"]
    qkv = (xn @ params["w_qkv"] + params["b_qkv"]).reshape(B, N, 3, heads, dim_head)
    q = jnp.transpose(qkv[:, :, 0], (0, 2, 1, 3)) * (dim_head ** -0.5)
    k = jnp.transpose(qkv[:, :, 1], (0, 2, 1, 3))
    v = jnp.transpose(qkv[:, :, 2], (0, 2, 1, 3))
    sim = jnp.einsum("bhid,bhjd->bhij", q, k)
    mask = jnp.triu(jnp.ones((N, N), dtype=bool), 1)
    sim = jnp.where(mask, -jnp.finfo(sim.dtype).max, sim)
    attn = jax.nn.softmax(sim, axis=-1)
    o = jnp.einsum("bhij,bhjd->bhid", attn, v)
    o = jnp.transpose(o, (0, 2, 1, 3)).reshape(B, N, dim_inner)
    return o @ params["w_out"] + params["b_out"]


# ----------------------------------------------------------------------------
# Main
# ----------------------------------------------------------------------------

if __name__ == "__main__":
    B, N, D = 2, 16, 64
    heads, dim_head = 4, 32            # E = 128 -> exercises fused-qkv path
    dim_inner = heads * dim_head

    key = jax.random.PRNGKey(0)
    k_x, k_wqkv, k_bqkv, k_wout, k_bout = jax.random.split(key, 5)

    x = jax.random.normal(k_x, (B, N, D), dtype=jnp.float32)
    params = {
        "gamma": jnp.ones((D,), dtype=jnp.float32),                           # RMSNorm.gamma
        "w_qkv": jax.random.normal(k_wqkv, (D, 3 * dim_inner), jnp.float32) * 0.02,
        "b_qkv": jax.random.normal(k_bqkv, (3 * dim_inner,), jnp.float32) * 0.02,
        "w_out": jax.random.normal(k_wout, (dim_inner, D), jnp.float32) * 0.02,
        "b_out": jax.random.normal(k_bout, (D,), jnp.float32) * 0.02,
    }

    ref = reference(x, params, heads=heads, dim_head=dim_head)

    # Single-tile path (small N -> one q/kv tile, diagonal/masked branch).
    out = causal_full_attention(x, params, heads=heads, dim_head=dim_head)
    out = jax.block_until_ready(out)
    assert out.shape == (B, N, D)
    assert jnp.allclose(out, ref, atol=2e-3, rtol=2e-3), "mismatch vs reference"

    # Multi-tile path: compacted causal grid (3 steps per batch for 2x2 tiles),
    # interior + diagonal branches, pl.when init/finalize, and a tiled QKV
    # projection with 3 output-column tiles + cached normalized rows.
    out_tiled = causal_full_attention(x, params, heads=heads, dim_head=dim_head,
                                      attn_block_q=8, attn_block_kv=8,
                                      qkv_block_n=128)
    out_tiled = jax.block_until_ready(out_tiled)
    assert jnp.allclose(out_tiled, ref, atol=2e-3, rtol=2e-3), \
        "tiled path mismatch vs reference"

    print("KERNEL_OK")
</pallas_src>

<mosaic_0001>
module attributes {stable_mosaic.version = 11 : i64} {
  func.func @_rmsnorm_qkv_kernel(%arg0: i32, %arg1: i32, %arg2: memref<32x64xf32, #tpu.memory_space<vmem>>, %arg3: memref<1x64xf32, #tpu.memory_space<vmem>>, %arg4: memref<64x384xf32, #tpu.memory_space<vmem>>, %arg5: memref<1x384xf32, #tpu.memory_space<vmem>>, %arg6: memref<1x384xf32, #tpu.memory_space<vmem>>, %arg7: memref<32x384xf32, #tpu.memory_space<vmem>>, %arg8: memref<32x64xf32, #tpu.memory_space<vmem>>) attributes {dimension_semantics = [#tpu.dimension_semantics<parallel>, #tpu.dimension_semantics<arbitrary>], iteration_bounds = array<i64: 1, 1>, scalar_prefetch = 0 : i64, scratch_operands = 1 : i64, tpu.core_type = #tpu.core_type<tc>, window_params = [{transform_indices = @transform_0, window_bounds = array<i64: 32, 64>}, {pipeline_mode = #tpu.pipeline_mode<synchronous>, transform_indices = @transform_1, window_bounds = array<i64: 1, 64>}, {transform_indices = @transform_2, window_bounds = array<i64: 64, 384>}, {transform_indices = @transform_3, window_bounds = array<i64: 1, 384>}, {transform_indices = @transform_4, window_bounds = array<i64: 1, 384>}, {transform_indices = @transform_5, window_bounds = array<i64: 32, 384>}]} {
    %c0_i32 = arith.constant 0 : i32
    %0 = arith.cmpi eq, %arg1, %c0_i32 : i32
    %1 = arith.extui %0 : i1 to i32
    %c0_i32_0 = arith.constant 0 : i32
    %2 = arith.cmpi ne, %1, %c0_i32_0 : i32
    scf.if %2 {
      %c0_10 = arith.constant 0 : index
      %c0_11 = arith.constant 0 : index
      %13 = vector.load %arg2[%c0_10, %c0_11] : memref<32x64xf32, #tpu.memory_space<vmem>>, vector<32x64xf32>
      %14 = arith.mulf %13, %13 : vector<32x64xf32>
      %cst_12 = arith.constant dense<0.000000e+00> : vector<32xf32>
      %15 = vector.multi_reduction <add>, %14, %cst_12 [1] : vector<32x64xf32> to vector<32xf32>
      %16 = vector.shape_cast %15 : vector<32xf32> to vector<32x1xf32>
      %17 = math.sqrt %16 : vector<32x1xf32>
      %cst_13 = arith.constant 9.99999996E-13 : f32
      %18 = vector.broadcast %cst_13 : f32 to vector<32x1xf32>
      %19 = arith.maximumf %17, %18 : vector<32x1xf32>
      %20 = vector.broadcast %19 : vector<32x1xf32> to vector<32x64xf32>
      %21 = arith.divf %13, %20 : vector<32x64xf32>
      %cst_14 = arith.constant 8.000000e+00 : f32
      %22 = vector.broadcast %cst_14 : f32 to vector<32x64xf32>
      %23 = arith.mulf %21, %22 : vector<32x64xf32>
      %c0_15 = arith.constant 0 : index
      %c0_16 = arith.constant 0 : index
      %24 = vector.load %arg3[%c0_15, %c0_16] : memref<1x64xf32, #tpu.memory_space<vmem>>, vector<1x64xf32>
      %25 = vector.broadcast %24 : vector<1x64xf32> to vector<32x64xf32>
      %26 = arith.mulf %23, %25 : vector<32x64xf32>
      %c0_17 = arith.constant 0 : index
      %c0_18 = arith.constant 0 : index
      %27 = vector.load %arg8[%c0_17, %c0_18] : memref<32x64xf32, #tpu.memory_space<vmem>>, vector<32x64xf32>
      tpu.vector_store %arg8[%c0_17, %c0_18], %26 {strides = array<i32>} : memref<32x64xf32, #tpu.memory_space<vmem>>, vector<32x64xf32>,
    } else {
    }
    %c0 = arith.constant 0 : index
    %c0_1 = arith.constant 0 : index
    %3 = vector.load %arg8[%c0, %c0_1] : memref<32x64xf32, #tpu.memory_space<vmem>>, vector<32x64xf32>
    %c0_2 = arith.constant 0 : index
    %c0_3 = arith.constant 0 : index
    %4 = vector.load %arg4[%c0_2, %c0_3] : memref<64x384xf32, #tpu.memory_space<vmem>>, vector<64x384xf32>
    %cst = arith.constant dense<0.000000e+00> : vector<32x384xf32>
    %5 = tpu.matmul %3, %4, %cst {dimension_numbers = #tpu.dot_dimension_numbers<[1], [0], [0], [1], [0, 0, 1, 1], [], []>} : vector<32x64xf32>, vector<64x384xf32>, vector<32x384xf32> -> vector<32x384xf32>
    %c0_4 = arith.constant 0 : index
    %c0_5 = arith.constant 0 : index
    %6 = vector.load %arg5[%c0_4, %c0_5] : memref<1x384xf32, #tpu.memory_space<vmem>>, vector<1x384xf32>
    %7 = vector.broadcast %6 : vector<1x384xf32> to vector<32x384xf32>
    %8 = arith.addf %5, %7 : vector<32x384xf32>
    %c0_6 = arith.constant 0 : index
    %c0_7 = arith.constant 0 : index
    %9 = vector.load %arg6[%c0_6, %c0_7] : memref<1x384xf32, #tpu.memory_space<vmem>>, vector<1x384xf32>
    %10 = vector.broadcast %9 : vector<1x384xf32> to vector<32x384xf32>
    %11 = arith.mulf %8, %10 : vector<32x384xf32>
    %c0_8 = arith.constant 0 : index
    %c0_9 = arith.constant 0 : index
    %12 = vector.load %arg7[%c0_8, %c0_9] : memref<32x384xf32, #tpu.memory_space<vmem>>, vector<32x384xf32>
    tpu.vector_store %arg7[%c0_8, %c0_9], %11 {strides = array<i32>} : memref<32x384xf32, #tpu.memory_space<vmem>>, vector<32x384xf32>,
    return
  }
  func.func @transform_0(%arg0: i32, %arg1: i32) -> (i32, i32) {
    %c0_i32 = arith.constant 0 : i32
    %c0_i32_0 = arith.constant 0 : i32
    return %arg0, %c0_i32 : i32, i32
  }
  func.func @transform_1(%arg0: i32, %arg1: i32) -> (i32, i32) {
    %c0_i32 = arith.constant 0 : i32
    %c0_i32_0 = arith.constant 0 : i32
    %c0_i32_1 = arith.constant 0 : i32
    return %c0_i32, %c0_i32_0 : i32, i32
  }
  func.func @transform_2(%arg0: i32, %arg1: i32) -> (i32, i32) {
    %c0_i32 = arith.constant 0 : i32
    %c0_i32_0 = arith.constant 0 : i32
    return %c0_i32, %arg1 : i32, i32
  }
  func.func @transform_3(%arg0: i32, %arg1: i32) -> (i32, i32) {
    %c0_i32 = arith.constant 0 : i32
    %c0_i32_0 = arith.constant 0 : i32
    return %c0_i32, %arg1 : i32, i32
  }
  func.func @transform_4(%arg0: i32, %arg1: i32) -> (i32, i32) {
    %c0_i32 = arith.constant 0 : i32
    %c0_i32_0 = arith.constant 0 : i32
    return %c0_i32, %arg1 : i32, i32
  }
  func.func @transform_5(%arg0: i32, %arg1: i32) -> (i32, i32) {
    %c0_i32 = arith.constant 0 : i32
    return %arg0, %arg1 : i32, i32
  }
}

</mosaic_0001>

<bundles_post_ra>
// kernel: tpu_custom_call.1
= control target key start
LH: loop header
LB: loop body
LE: loop exit
PB: predicated region body
PF: predicated region fallthrough
CT: control target
= control target key end

     0   :  { %10 = vsyncpa [#allocation4], 0  ;;  %s659_s0 = inlined_call_operand.hbm [shape: f32[32,64], index: 0, kind: input, shape index: {}]   ;;  %s660_s1 = inlined_call_operand.vmem [shape: f32[1,64], index: 1, kind: input, shape index: {}]   ;;  %s661_s2 = inlined_call_operand.hbm [shape: f32[64,384], index: 2, kind: input, shape index: {}]   ;;  %s662_s3 = inlined_call_operand.vmem [shape: f32[1,384], index: 3, kind: input, shape index: {}]   ;;  %s663_s4 = inlined_call_operand.vmem [shape: f32[1,384], index: 4, kind: input, shape index: {}]   ;;  %s664_s5 = inlined_call_operand.hbm [shape: f32[32,384], index: 5, kind: output, shape index: {}]  }
   0x1   :  { %11 = vsyncpa [#allocation7], 0 }
   0x2   :  { %12 = vsyncpa [#allocation5], 0  ;;  %s557_s18 = smov [#allocation3]  }
   0x3   :  { %s18_s19 = sshll.u32 %s557_s18, 4  ;;  %s19_s19 = int_to_ptr.vmem [resolvable:$true] %s18_s19 }
   0x4   :  { %s499_s20 = scalar_lea.vmem %s19_s19, 512  ;;  %p504_p1 = scmp.lt.s32.totalorder %s19_s19, %s19_s19 }
   0x5   :  { %p500_p0 = scmp.ne.s32.totalorder %s19_s19, %s499_s20  ;;  %p505_p2 = scmp.lt.s32.totalorder %s499_s20, %s499_s20 }
   0x7   :  { %p506_p3 = por %p505_p2, %p504_p1 }
   0x9   :  { %p507_p4 = pnand %p506_p3, %p500_p0 }
   0xb   :  { %510 = shalt.err (!%p507_p4)
}
   0xc   :  { %s558_s21 = smov 128   ;;  %s559_s22 = smov 8  }
   0xd   :  { %24 = dma.hbm_to_vmem [thread:$0]  %s659_s0, 512, %s19_s19, [#allocation4], %s558_s21, %s558_s21, %s559_s22  }
   0xe   :  { %s560_s25 = smov [#allocation6]  }
   0xf   :  { %s32_s26 = sshll.u32 %s560_s25, 4  ;;  %s33_s26 = int_to_ptr.vmem [resolvable:$true] %s32_s26 }
  0x10   :  { %s519_s27 = scalar_lea.vmem %s33_s26, 3072  ;;  %p524_p6 = scmp.lt.s32.totalorder %s33_s26, %s33_s26 }
  0x11   :  { %p520_p5 = scmp.ne.s32.totalorder %s33_s26, %s519_s27  ;;  %p525_p7 = scmp.lt.s32.totalorder %s519_s27, %s519_s27 }
  0x13   :  { %p526_p8 = por %p525_p7, %p524_p6 }
  0x15   :  { %p527_p9 = pnand %p526_p8, %p520_p5 }
  0x17   :  { %530 = shalt.err (!%p527_p9)
}
  0x18   :  { %s561_s28 = smov 384   ;;  %s562_s29 = smov 24  }
  0x19   :  { %38 = dma.hbm_to_vmem [thread:$0]  %s661_s2, 3072, %s33_s26, [#allocation7], %s561_s28, %s561_s28, %s562_s29  }
  0x1a   :  { %551 = dma.done.wait [#allocation4], 512  }
  0x1b   :  { %552 = vsyncadd [#allocation4], 4294966784 }
  0x1c   :  { %553 = dma.done.wait [#allocation7], 3072  }
  0x1d   :  { %554 = vsyncadd [#allocation7], 4294964224  ;;  %v604_v0 = vld [vmem:[#allocation3 + $0x10] sm:$0xff]  ;;  %vm61_vm0 = vcmask 523264   ;;  %v606_v1 = vld [vmem:[#allocation3] sm:$0xff]  ;;  %v563_v34 = vmov 0.0  }
  0x1e   :  { %v608_v2 = vld [vmem:[#allocation3 + $0x18] sm:$0xff]  ;;  %v59_v3 = vmul.f32 %v604_v0, %v604_v0  ;;  %v57_v4 = vmul.f32 %v606_v1, %v606_v1  ;;  %v616_v6 = vld [vmem:[#allocation3 + $0x8] sm:$0xff]  ;;  %v159_v12 = vld [vmem:[#allocation6 + $0xb0] sm:$0xff]  ;;  %255 = vmatprep.mubr.f32.mxu0 %v563_v34 }
  0x1f   :  { %v60_v5 = vmul.f32 %v608_v2, %v608_v2  ;;  %v58_v7 = vmul.f32 %v616_v6, %v616_v6  ;;  %207 = vmatprep.subr.mxu0 %v159_v12  ;;  %v158_v13 = vld [vmem:[#allocation6 + $0xa8] sm:$0xff]  ;;  %v156_v14 = vld [vmem:[#allocation6 + $0x98] sm:$0xff]  ;;  %v155_v15 = vld [vmem:[#allocation6 + $0x90] sm:$0xff] }
  0x20   :  { %v68_v8 = vsel %vm61_vm0, %v59_v3, 0.0  ;;  %v62_v9 = vsel %vm61_vm0, %v57_v4, 0.0  ;;  %208 = vmatpush1.msra.mxu0 %v158_v13  ;;  %v153_v16 = vld [vmem:[#allocation6 + $0x80] sm:$0xff]  ;;  %v160_v17 = vld [vmem:[#allocation6 + $0xb8] sm:$0xff]  ;;  %v150_v19 = vld [vmem:[#allocation6 + $0x68] sm:$0xff] }
  0x21   :  { %69 = vadd.xlane.f32.xlu1 %v68_v8  ;;  %63 = vadd.xlane.f32.xlu0 %v62_v9  ;;  %v71_v10 = vsel %vm61_vm0, %v60_v5, 0.0  ;;  %v65_v11 = vsel %vm61_vm0, %v58_v7, 0.0  ;;  %v152_v18 = vld [vmem:[#allocation6 + $0x78] sm:$0xff]  ;;  %v157_v20 = vld [vmem:[#allocation6 + $0xa0] sm:$0xff]  ;;  %v147_v22 = vld [vmem:[#allocation6 + $0x50] sm:$0xff] }
  0x22   :  { %209 = vmatprep.subr.mxu0 %v156_v14  ;;  %445 = vmatprep.subr.mxu1 %v160_v17  ;;  %v149_v21 = vld [vmem:[#allocation6 + $0x60] sm:$0xff]  ;;  %v154_v23 = vld [vmem:[#allocation6 + $0x88] sm:$0xff]  ;;  %v144_v25 = vld [vmem:[#allocation6 + $0x38] sm:$0xff] }
  0x23   :  { %210 = vmatpush1.msra.mxu0 %v155_v15  ;;  %446 = vmatpush3.msra.mxu1 %v160_v17  ;;  %v146_v24 = vld [vmem:[#allocation6 + $0x48] sm:$0xff]  ;;  %v151_v26 = vld [vmem:[#allocation6 + $0x70] sm:$0xff]  ;;  %v141_v28 = vld [vmem:[#allocation6 + $0x20] sm:$0xff] }
  0x24   :  { %211 = vmatprep.subr.mxu0 %v153_v16  ;;  %447 = vmatprep.subr.mxu1 %v157_v20  ;;  %v143_v27 = vld [vmem:[#allocation6 + $0x30] sm:$0xff]  ;;  %v148_v29 = vld [vmem:[#allocation6 + $0x58] sm:$0xff]  ;;  %v138_v31 = vld [vmem:[#allocation6 + $0x8] sm:$0xff] }
  0x25   :  { %72 = vadd.xlane.f32.xlu1 %v71_v10  ;;  %66 = vadd.xlane.f32.xlu0 %v65_v11  ;;  %v140_v30 = vld [vmem:[#allocation6 + $0x18] sm:$0xff]  ;;  %v145_v32 = vld [vmem:[#allocation6 + $0x40] sm:$0xff]  ;;  %v142_v35 = vld [vmem:[#allocation6 + $0x28] sm:$0xff] }
  0x26   :  { %212 = vmatpush1.msra.mxu0 %v152_v18  ;;  %448 = vmatpush3.msra.mxu1 %v157_v20  ;;  %v137_v33 = vld [vmem:[#allocation6] sm:$0xff]  ;;  %v139_v36 = vld [vmem:[#allocation6 + $0x10] sm:$0xff] }
  0x27   :  { %213 = vmatprep.subr.mxu0 %v150_v19  ;;  %449 = vmatprep.subr.mxu1 %v154_v23  ;;  %v424_v8 = vld [vmem:[%s660_s1] ss:$0 sm:$0xff] }
  0x28   :  { %214 = vmatpush1.msra.mxu0 %v149_v21  ;;  %450 = vmatpush3.msra.mxu1 %v154_v23 }
  0x29   :  { %215 = vmatprep.subr.mxu0 %v147_v22  ;;  %451 = vmatprep.subr.mxu1 %v151_v26  ;;  %v163_v22 = vlaneseq }
  0x2a   :  { %216 = vmatpush1.msra.mxu0 %v146_v24  ;;  %452 = vmatpush3.msra.mxu1 %v151_v26 }
  0x2b   :  { %217 = vmatprep.subr.mxu0 %v144_v25  ;;  %453 = vmatprep.subr.mxu1 %v148_v29  ;;  %v164_v23 = vshrl.u32 %v163_v22, 7  ;;  %v161_v25 = vld [vmem:[%s662_s3] sm:$0x7]  ;;  %s564_s3 = smov [#allocation8]  }
  0x2c   :  { %218 = vmatpush1.msra.mxu0 %v143_v27  ;;  %454 = vmatpush3.msra.mxu1 %v148_v29  ;;  %v365_v27 = vld [vmem:[%s663_s4] sm:$0x7]  ;;  %s411_s4 = sshll.u32 %s564_s3, 4  ;;  %s412_s4 = int_to_ptr.vmem [resolvable:$true] %s411_s4 }
  0x2d   :  { %219 = vmatprep.subr.mxu0 %v141_v28  ;;  %455 = vmatprep.subr.mxu1 %v145_v32  ;;  %v165_v24 = vsub.s32 0, %v164_v23  ;;  %v169_v26 = vsub.s32 1, %v164_v23  ;;  %v173_v29 = vsub.s32 2, %v164_v23  ;;  %s531_s10 = scalar_lea.vmem %s412_s4, 1536  ;;  %p536_p11 = scmp.lt.s32.totalorder %s412_s4, %s412_s4 }
  0x2e   :  { %220 = vmatpush1.msra.mxu0 %v140_v30  ;;  %456 = vmatpush3.msra.mxu1 %v145_v32  ;;  %p532_p10 = scmp.ne.s32.totalorder %s412_s4, %s531_s10  ;;  %p537_p12 = scmp.lt.s32.totalorder %s531_s10, %s531_s10 }
  0x2f   :  { %221 = vmatprep.subr.mxu0 %v138_v31  ;;  %457 = vmatprep.subr.mxu1 %v142_v35  ;;  %v166_v28 = vrot.slane %v161_v25, %v165_v24  ;;  %v370_v30 = vrot.slane %v365_v27, %v165_v24  ;;  %v170_v31 = vrot.slane %v161_v25, %v169_v26 }
  0x30   :  { %222 = vmatpush1.msra.mxu0 %v137_v33  ;;  %458 = vmatpush3.msra.mxu1 %v142_v35  ;;  %v174_v35 = vrot.slane %v161_v25, %v173_v29  ;;  %p538_p13 = por %p537_p12, %p536_p11 }
  0x31   :  { %459 = vmatprep.subr.mxu1 %v139_v36 }
  0x32   :  { %460 = vmatpush3.msra.mxu1 %v139_v36  ;;  %p539_p0 = pnand %p538_p13, %p532_p10 }
  0xaa   :  { %v70_v37 = vpop.xlane.xlu1 %69  ;;  %v64_v38 = vpop.xlane.xlu0 %63 }
  0xab   :  { %475 = vrsqrt.f32 %v70_v37  ;;  %vm90_vm1 = vcmp.eq.f32.partialorder %v70_v37, inf  ;;  %v93_v44 = vand.u32 2147483648, %v70_v37  ;;  %vm92_vm2 = vcmp.eq.f32.partialorder %v70_v37, 0.0 }
  0xac   :  { %477 = vrsqrt.f32 %v64_v38  ;;  %vm76_vm3 = vcmp.eq.f32.partialorder %v64_v38, inf  ;;  %v79_v47 = vand.u32 2147483648, %v64_v38  ;;  %vm78_vm4 = vcmp.eq.f32.partialorder %v64_v38, 0.0 }
  0xae   :  { %v73_v39 = vpop.xlane.xlu1 %72  ;;  %v67_v40 = vpop.xlane.xlu0 %66 }
  0xaf   :  { %479 = vrsqrt.f32 %v73_v39  ;;  %vm97_vm5 = vcmp.eq.f32.partialorder %v73_v39, inf  ;;  %vm99_vm6 = vcmp.eq.f32.partialorder %v73_v39, 0.0  ;;  %v100_v56 = vand.u32 2147483648, %v73_v39 }
  0xb0   :  { %481 = vrsqrt.f32 %v67_v40  ;;  %vm83_vm7 = vcmp.eq.f32.partialorder %v67_v40, inf  ;;  %v86_v59 = vand.u32 2147483648, %v67_v40  ;;  %vm85_vm8 = vcmp.eq.f32.partialorder %v67_v40, 0.0 }
  0xb8   :  { %v476_v41 = vpop.eup %475 }
  0xb9   :  { %v478_v42 = vpop.eup %477  ;;  %v89_v43 = vmul.f32 %v476_v41, %v70_v37 }
  0xba   :  { %v75_v45 = vmul.f32 %v478_v42, %v64_v38 }
  0xbb   :  { %v91_v46 = vsel %vm90_vm1, %v70_v37, %v89_v43 }
  0xbc   :  { %v480_v48 = vpop.eup %479  ;;  %v94_v49 = vsel %vm92_vm2, %v93_v44, %v91_v46  ;;  %v77_v50 = vsel %vm76_vm3, %v64_v38, %v75_v45 }
  0xbd   :  { %v482_v51 = vpop.eup %481  ;;  %v104_v52 = vmax.f32 %v94_v49, 1e-12  ;;  %v80_v53 = vsel %vm78_vm4, %v79_v47, %v77_v50  ;;  %v96_v54 = vmul.f32 %v480_v48, %v73_v39 }
  0xbe   :  { %v102_v55 = vmax.f32 %v80_v53, 1e-12  ;;  %v82_v57 = vmul.f32 %v482_v51, %v67_v40 }
  0xbf   :  { %483 = vrcp.f32 %v104_v52  ;;  %v98_v58 = vsel %vm97_vm5, %v73_v39, %v96_v54  ;;  %v378_v39 = vrot.slane %v365_v27, %v173_v29 }
  0xc0   :  { %485 = vrcp.f32 %v102_v55  ;;  %v101_v60 = vsel %vm99_vm6, %v100_v56, %v98_v58  ;;  %v84_v61 = vsel %vm83_vm7, %v67_v40, %v82_v57 }
  0xc1   :  { %v105_v62 = vmax.f32 %v101_v60, 1e-12  ;;  %v87_v63 = vsel %vm85_vm8, %v86_v59, %v84_v61 }
  0xc2   :  { %v103_v3 = vmax.f32 %v87_v63, 1e-12 }
  0xc3   :  { %487 = vrcp.f32 %v105_v62 }
  0xc4   :  { %489 = vrcp.f32 %v103_v3 }
  0xcc   :  { %v484_v4 = vpop.eup %483 }
  0xcd   :  { %v486_v5 = vpop.eup %485  ;;  %v111_v7 = vmul.f32 %v484_v4, %v604_v0 }
  0xce   :  { %v107_v9 = vmul.f32 %v486_v5, %v606_v1 }
  0xcf   :  { %v116_v10 = vmul.f32 8.0, %v111_v7 }
  0xd0   :  { %v488_v11 = vpop.eup %487  ;;  %v114_v12 = vmul.f32 8.0, %v107_v9 }
  0xd1   :  { %v490_v13 = vpop.eup %489  ;;  %v127_v14 = vmul.f32 %v424_v8, %v116_v10  ;;  %v113_v15 = vmul.f32 %v488_v11, %v608_v2 }
  0xd2   :  { %v125_v16 = vmul.f32 %v424_v8, %v114_v12  ;;  %v109_v17 = vmul.f32 %v490_v13, %v616_v6 }
  0xd3   :  { %131 = vst.msk [vmem:[#allocation2 + $0x10] sm:$0xff] %vm61_vm0, %v127_v14  ;;  %v117_v18 = vmul.f32 8.0, %v113_v15 }
  0xd4   :  { %129 = vst.msk [vmem:[#allocation2] sm:$0xff] %vm61_vm0, %v125_v16  ;;  %v115_v0 = vmul.f32 8.0, %v109_v17 }
  0xd5   :  { %v128_v19 = vmul.f32 %v424_v8, %v117_v18 }
  0xd6   :  { %v126_v20 = vmul.f32 %v424_v8, %v115_v0 }
  0xd7   :  { %132 = vst.msk [vmem:[#allocation2 + $0x18] sm:$0xff] %vm61_vm0, %v128_v19 }
  0xd8   :  { %130 = vst.msk [vmem:[#allocation2 + $0x8] sm:$0xff] %vm61_vm0, %v126_v20 }
  0xda   :  { %v135_v6 = vld [vmem:[#allocation2 + $0x10] sm:$0xff] }
  0xdb   :  { %v133_v1 = vld [vmem:[#allocation2] sm:$0xff] }
  0xdc   :  { %425 = vmatmul.mubr.msk.f32.vlgmr.msra.gmra.mxu0 %vm61_vm0, %v133_v1  ;;  %461 = vmatprep.mubr.msk.f32.mxu1 %vm61_vm0, %v133_v1 }
  0xdd   :  { %261 = vmatprep.mubr.f32.mxu0 %v563_v34 }
  0xde   :  { %v136_v21 = vld [vmem:[#allocation2 + $0x18] sm:$0xff] }
  0xdf   :  { %v134_v2 = vld [vmem:[#allocation2 + $0x8] sm:$0xff] }
  0xe0   :  { %426 = vmatmul.mubr.msk.f32.gmra.mxu0 %vm61_vm0, %v134_v2  ;;  %462 = vmatmul.mubr.msk.f32.vlgmr.msra.gmra.mxu1 %vm61_vm0, %v134_v2 }
  0xe1   :  { %464 = vmatprep.mubr.msk.f32.mxu1 %vm61_vm0, %v135_v6  ;;  %267 = vmatprep.mubr.f32.mxu0 %v563_v34 }
  0xe4   :  { %427 = vmatmul.mubr.msk.f32.gmra.mxu0 %vm61_vm0, %v135_v6  ;;  %465 = vmatmul.mubr.msk.f32.gmra.mxu1 %vm61_vm0, %v136_v21 }
  0xe5   :  { %273 = vmatprep.mubr.f32.mxu0 %v563_v34  ;;  %v374_v34 = vrot.slane %v365_v27, %v169_v26 }
  0xe8   :  { %428 = vmatmul.mubr.msk.f32.gmra.mxu0 %vm61_vm0, %v136_v21 }
 0x19c   :  { %v257_v32 = vpop.f32.mrf.mxu0 }
 0x19d   :  { %v258_v33 = vadd.f32 %v257_v32, %v166_v28 }
 0x19e   :  { %v259_v36 = vpop.f32.mrf.mxu0 }
 0x19f   :  { %v382_v37 = vmul.f32 %v370_v30, %v258_v33  ;;  %v260_v38 = vadd.f32 %v259_v36, %v170_v31 }
 0x1a0   :  { %v263_v40 = vpop.f32.mrf.mxu0  ;;  %v463_v41 = vpop.f32.mrf.mxu1 }
 0x1a1   :  { %394 = vst [vmem:[#allocation8] sm:$0xff] %v382_v37  ;;  %v383_v42 = vmul.f32 %v374_v34, %v260_v38  ;;  %v264_v43 = vadd.f32 %v263_v40, %v166_v28  ;;  %v352_v44 = vadd.f32 %v463_v41, %v174_v35 }
 0x1a2   :  { %v265_v45 = vpop.f32.mrf.mxu0  ;;  %v346_v46 = vpop.f32.mrf.mxu1 }
 0x1a3   :  { %395 = vst [vmem:[#allocation8 + $0x8] sm:$0xff] %v383_v42  ;;  %v385_v47 = vmul.f32 %v370_v30, %v264_v43  ;;  %v387_v48 = vmul.f32 %v378_v39, %v352_v44  ;;  %v266_v49 = vadd.f32 %v265_v45, %v170_v31  ;;  %v347_v50 = vadd.f32 %v346_v46, %v174_v35 }
 0x1a4   :  { %v269_v51 = vpop.f32.mrf.mxu0  ;;  %v466_v52 = vpop.f32.mrf.mxu1 }
 0x1a5   :  { %397 = vst [vmem:[#allocation8 + $0x18] sm:$0xff] %v385_v47  ;;  %399 = vst [vmem:[#allocation8 + $0x28] sm:$0xff] %v387_v48  ;;  %v386_v53 = vmul.f32 %v374_v34, %v266_v49  ;;  %v384_v54 = vmul.f32 %v378_v39, %v347_v50  ;;  %v270_v55 = vadd.f32 %v269_v51, %v166_v28 }
 0x1a6   :  { %v362_v56 = vadd.f32 %v466_v52, %v174_v35  ;;  %v271_v57 = vpop.f32.mrf.mxu0  ;;  %v356_v58 = vpop.f32.mrf.mxu1 }
 0x1a7   :  { %398 = vst [vmem:[#allocation8 + $0x20] sm:$0xff] %v386_v53  ;;  %396 = vst [vmem:[#allocation8 + $0x10] sm:$0xff] %v384_v54  ;;  %v388_v59 = vmul.f32 %v370_v30, %v270_v55  ;;  %v272_v61 = vadd.f32 %v271_v57, %v170_v31  ;;  %v357_v62 = vadd.f32 %v356_v58, %v174_v35 }
 0x1a8   :  { %v393_v60 = vmul.f32 %v378_v39, %v362_v56  ;;  %v275_v63 = vpop.f32.mrf.mxu0 }
 0x1a9   :  { %400 = vst [vmem:[#allocation8 + $0x30] sm:$0xff] %v388_v59  ;;  %v389_v3 = vmul.f32 %v374_v34, %v272_v61  ;;  %v390_v4 = vmul.f32 %v378_v39, %v357_v62  ;;  %v276_v5 = vadd.f32 %v275_v63, %v166_v28 }
 0x1aa   :  { %405 = vst [vmem:[#allocation8 + $0x58] sm:$0xff] %v393_v60  ;;  %v277_v7 = vpop.f32.mrf.mxu0 }
 0x1ab   :  { %401 = vst [vmem:[#allocation8 + $0x38] sm:$0xff] %v389_v3  ;;  %402 = vst [vmem:[#allocation8 + $0x40] sm:$0xff] %v390_v4  ;;  %v391_v8 = vmul.f32 %v370_v30, %v276_v5  ;;  %v278_v9 = vadd.f32 %v277_v7, %v170_v31 }
 0x1ad   :  { %403 = vst [vmem:[#allocation8 + $0x48] sm:$0xff] %v391_v8  ;;  %v392_v10 = vmul.f32 %v374_v34, %v278_v9 }
 0x1af   :  { %404 = vst [vmem:[#allocation8 + $0x50] sm:$0xff] %v392_v10 }
 0x1b0   :  { %542 = shalt.err (!%p539_p0)
}
 0x1b1   :  { %417 = dma.vmem_to_hbm [thread:$0]  %s412_s4, 1536, %s664_s5, [#allocation5], %s561_s28, %s561_s28, %s562_s29  }
 0x1b2   :  { %555 = dma.done.wait [#allocation5], 1536  }
 0x1b3   :  { %556 = vsyncadd [#allocation5], 4294965760 }
 0x1b4   :  { %421 = vsyncpa [#allocation4], 1 }
 0x1b5   :  { %422 = vsyncpa [#allocation7], 1 }
 0x1b6   :  { %423 = vsyncpa [#allocation5], 1 }

</bundles_post_ra>
